<compile_context>
chip_gen: v7x
topology: tpu7x:2x2x1
jax: 0.10.0
libtpu: 0.0.40
codegen_flags: <defaults>
</compile_context>

<pallas_src>
import jax
import jax.numpy as jnp
from jax.experimental import pallas as pl
from jax.experimental.pallas import tpu as pltpu


def _round_up(x, m):
    return ((x + m - 1) // m) * m


def make_textcnn_kernel(seq_len, k_max):
    """Fused (T-reduction -> conv+pool matmul -> ReLU -> decoder) kernel body."""

    def kernel(x_ref, w_ref, b_ref, dw_ref, db_ref, logits_ref, feats_ref):
        # x_ref: (TILE_B, T, 2E) bf16; upcast once, accumulate in f32.
        xf = x_ref[...].astype(jnp.float32)

        # Build the compact activation slab: one full-sequence sum plus the
        # 2*(k_max-1) boundary rows.  All per-conv / per-tap coefficients
        # (1/L scaling, tap sums, boundary corrections) live in w_ref.
        pieces = [jnp.sum(xf, axis=1)]                       # (TILE_B, 2E)
        for m in range(k_max - 1):                           # front rows t = m
            pieces.append(xf[:, m, :])
        for m in range(k_max - 1):                           # back rows t = T-(k_max-1)+m
            pieces.append(xf[:, seq_len - (k_max - 1) + m, :])
        xs = jnp.concatenate(pieces, axis=-1)                # (TILE_B, (2k_max-1)*2E)

        # Single fused conv+avg-pool matmul over all convs -> lane-dense slab.
        feats = jnp.dot(xs.astype(w_ref.dtype), w_ref[...],
                        preferred_element_type=jnp.float32)
        feats = jnp.maximum(feats + b_ref[...], 0.0)         # bias + ReLU (after pool)
        feats_ref[...] = feats

        # dropout(p=0.5) is identity at inference time.
        logits_ref[...] = (
            jnp.dot(feats.astype(dw_ref.dtype), dw_ref[...],
                    preferred_element_type=jnp.float32)
            + db_ref[...])                                   # (TILE_B, OUT_PAD)

    return kernel


def pack_textcnn_params(conv_params, dec_w, dec_b, kernel_sizes, num_channels,
                        embed2, seq_len, c_pad=128, out_pad=128,
                        param_dtype=jnp.float32):
    """Pack PyTorch-layout params into 4 dense, lane-padded slabs (one-time).

    conv_params[i] = (weight (c_i, 2E, k_i), bias (c_i,))   # nn.Conv1d layout
    dec_w          = (2, sum_c), dec_b = (2,)               # nn.Linear layout

    The packed conv slab already folds the AdaptiveAvgPool1d(1) mean, the
    per-tap sums and the boundary-row corrections, so that
        feats = relu( [sum_t x_t, x_0..x_{kmax-2}, x_{T-kmax+1}..x_{T-1}] @ W + b )
    equals conv -> mean-pool -> relu exactly.
    """
    k_max = max(kernel_sizes)
    n_blk = 2 * k_max - 1
    k_rows = n_blk * embed2
    sum_c = sum(num_channels)

    w_packed = jnp.zeros((k_rows, c_pad), jnp.float32)
    b_packed = jnp.zeros((1, c_pad), jnp.float32)
    col = 0
    for (w_pt, b), k, c in zip(conv_params, kernel_sizes, num_channels):
        w = jnp.transpose(jnp.asarray(w_pt, jnp.float32), (2, 1, 0))  # (k, 2E, c)
        inv_l = 1.0 / float(seq_len - k + 1)
        coeff = jnp.zeros((n_blk, embed2, c), jnp.float32)
        # block 0: full-sequence sum gets (1/L) * sum of all taps
        coeff = coeff.at[0].set(inv_l * jnp.sum(w, axis=0))
        # front boundary rows t = m, m = 0..k_max-2
        for m in range(k_max - 1):
            if m <= k - 2:
                coeff = coeff.at[1 + m].set(-inv_l * jnp.sum(w[m + 1:k], axis=0))
        # back boundary rows t = T-(k_max-1)+m  (distance from end j = k_max-2-m)
        for m in range(k_max - 1):
            j = k_max - 2 - m
            if j <= k - 2:
                coeff = coeff.at[k_max + m].set(
                    -inv_l * jnp.sum(w[:k - 1 - j], axis=0))
        w_packed = w_packed.at[:, col:col + c].set(coeff.reshape(k_rows, c))
        b_packed = b_packed.at[:, col:col + c].set(
            jnp.asarray(b, jnp.float32).reshape(1, c))
        col += c

    dw_pad = jnp.zeros((c_pad, out_pad), jnp.float32).at[:sum_c, :2].set(
        jnp.asarray(dec_w, jnp.float32).T)
    db_pad = jnp.zeros((1, out_pad), jnp.float32).at[:, :2].set(
        jnp.asarray(dec_b, jnp.float32).reshape(1, 2))
    return (w_packed.astype(param_dtype), b_packed,
            dw_pad.astype(param_dtype), db_pad)


def textcnn_pallas_forward(x_emb, packed, kernel_sizes, num_channels, *, tile_b=128):
    """x_emb: (B, T, 2E) channel-last activations (bf16 recommended)."""
    w_packed, b_packed, dw_pad, db_pad = packed
    B, T, c2e = x_emb.shape
    k_max = max(kernel_sizes)
    assert T >= k_max, "sequence shorter than the largest conv kernel"
    assert w_packed.shape[0] == (2 * k_max - 1) * c2e
    sum_c = sum(num_channels)
    c_pad = w_packed.shape[1]
    out_pad = dw_pad.shape[1]

    # Batch tile: multiple of 8 sublanes; resident weights + 2 double-buffered
    # x tiles easily fit the scoped VMEM limit on v5e/v6e/v7x.
    tile_b = _round_up(min(tile_b, B), 8)
    b_pad = _round_up(B, tile_b)
    if b_pad != B:
        x_emb = jnp.pad(x_emb, ((0, b_pad - B), (0, 0), (0, 0)))
    nb = b_pad // tile_b

    kernel = make_textcnn_kernel(T, k_max)

    flops = int(2 * b_pad * (w_packed.shape[0] * c_pad + c_pad * out_pad)
                + b_pad * T * c2e)
    bytes_accessed = int(x_emb.size * x_emb.dtype.itemsize
                         + sum(a.size * a.dtype.itemsize
                               for a in (w_packed, b_packed, dw_pad, db_pad))
                         + b_pad * (out_pad + c_pad) * 4)

    const2 = lambda i: (0, 0)   # weights: constant block -> DMA hoisted / VMEM-resident
    logits_pad, feats_pad = pl.pallas_call(
        kernel,
        grid=(nb,),
        in_specs=[
            pl.BlockSpec((tile_b, T, c2e), lambda i: (i, 0, 0)),
            pl.BlockSpec(w_packed.shape, const2),
            pl.BlockSpec(b_packed.shape, const2),
            pl.BlockSpec(dw_pad.shape, const2),
            pl.BlockSpec(db_pad.shape, const2),
        ],
        out_specs=(pl.BlockSpec((tile_b, out_pad), lambda i: (i, 0)),
                   pl.BlockSpec((tile_b, c_pad), lambda i: (i, 0))),
        out_shape=(jax.ShapeDtypeStruct((b_pad, out_pad), jnp.float32),
                   jax.ShapeDtypeStruct((b_pad, c_pad), jnp.float32)),
        compiler_params=pltpu.CompilerParams(
            dimension_semantics=("parallel",)),
        cost_estimate=pl.CostEstimate(flops=flops, transcendentals=0,
                                      bytes_accessed=bytes_accessed),
    )(x_emb, w_packed, b_packed, dw_pad, db_pad)

    return {"logits": logits_pad[:B, :2], "feats": feats_pad[:B, :sum_c]}


def ref_forward(x_emb_f32, conv_params, dec_w, dec_b, kernel_sizes):
    """Pure-JAX reference mirroring the PyTorch forward (conv -> pool -> relu)."""
    B, T, _ = x_emb_f32.shape
    feats = []
    for (w_pt, b), k in zip(conv_params, kernel_sizes):
        w = jnp.asarray(w_pt, jnp.float32)                       # (c, 2E, k)
        L = T - k + 1
        outs = []
        for t in range(L):
            window = x_emb_f32[:, t:t + k, :]                    # (B, k, 2E)
            outs.append(jnp.einsum("bke,cek->bc", window, w) + b.reshape(1, -1))
        conv_out = jnp.stack(outs, axis=-1)                      # (B, c, L)
        pooled = jnp.mean(conv_out, axis=-1)                     # AdaptiveAvgPool1d(1)
        feats.append(jnp.maximum(pooled, 0.0))                   # ReLU after pool
    feats = jnp.concatenate(feats, axis=1)
    logits = feats @ jnp.asarray(dec_w, jnp.float32).T + dec_b.reshape(1, -1)
    return logits, feats


if __name__ == "__main__":
    # Small config consistent with TextCNN.__init__
    vocab_size = 50
    embed_size = 16                      # 2*embed_size = 32 conv in-channels
    kernel_sizes = (3, 4, 5)
    num_channels = (8, 8, 8)             # sum = 24
    B, T = 16, 12
    tile_b = 8                           # -> grid of 2 "parallel" batch tiles

    key = jax.random.PRNGKey(0)
    keys = jax.random.split(key, 4 + 2 * len(kernel_sizes))

    emb1 = jax.random.normal(keys[0], (vocab_size, embed_size), jnp.float32) * 0.1
    emb2 = jax.random.normal(keys[1], (vocab_size, embed_size), jnp.float32) * 0.1

    # PyTorch-layout parameters: Conv1d weight (c, 2E, k), bias (c,)
    conv_params = []
    for i, (c, k) in enumerate(zip(num_channels, kernel_sizes)):
        w = jax.random.normal(keys[2 + 2 * i],
                              (c, 2 * embed_size, k), jnp.float32) * 0.1
        b = jax.random.normal(keys[3 + 2 * i], (c,), jnp.float32) * 0.1
        conv_params.append((w, b))

    # nn.Linear(sum_c, 2): weight (2, sum_c), bias (2,)
    dec_w = jax.random.normal(keys[-2], (2, sum(num_channels)), jnp.float32) * 0.1
    dec_b = jax.random.normal(keys[-1], (2,), jnp.float32) * 0.1

    token_ids = jax.random.randint(jax.random.PRNGKey(42), (B, T), 0, vocab_size)

    # Glue: embedding gather + concat (plain JAX), bf16 activation stream.
    x_emb = jnp.concatenate([emb1[token_ids], emb2[token_ids]], axis=-1)  # (B,T,2E)
    x_emb_bf16 = x_emb.astype(jnp.bfloat16)

    packed = pack_textcnn_params(conv_params, dec_w, dec_b,
                                 kernel_sizes, num_channels,
                                 2 * embed_size, T)

    out = textcnn_pallas_forward(x_emb_bf16, packed, kernel_sizes, num_channels,
                                 tile_b=tile_b)
    logits = jax.block_until_ready(out["logits"])
    feats = jax.block_until_ready(out["feats"])

    # Reference uses the same bf16-rounded activations and the original f32
    # parameters; residual differences come only from summation order / MXU
    # precision inside the kernel.
    x_ref = x_emb_bf16.astype(jnp.float32)
    ref_logits, ref_feats = ref_forward(x_ref, conv_params, dec_w, dec_b,
                                        kernel_sizes)

    assert logits.shape == (B, 2) and feats.shape == (B, sum(num_channels))
    assert jnp.allclose(feats, ref_feats, rtol=2e-2, atol=5e-3), \
        float(jnp.max(jnp.abs(feats - ref_feats)))
    assert jnp.allclose(logits, ref_logits, rtol=2e-2, atol=5e-3), \
        float(jnp.max(jnp.abs(logits - ref_logits)))
    print("KERNEL_OK")
</pallas_src>

<mosaic_0001>
module attributes {stable_mosaic.version = 11 : i64} {
  func.func @kernel(%arg0: i32, %arg1: memref<8x12x32xbf16, #tpu.memory_space<vmem>>, %arg2: memref<288x128xf32, #tpu.memory_space<vmem>>, %arg3: memref<1x128xf32, #tpu.memory_space<vmem>>, %arg4: memref<128x128xf32, #tpu.memory_space<vmem>>, %arg5: memref<1x128xf32, #tpu.memory_space<vmem>>, %arg6: memref<8x128xf32, #tpu.memory_space<vmem>>, %arg7: memref<8x128xf32, #tpu.memory_space<vmem>>) attributes {dimension_semantics = [#tpu.dimension_semantics<parallel>], iteration_bounds = array<i64: 2>, scalar_prefetch = 0 : i64, scratch_operands = 0 : i64, tpu.core_type = #tpu.core_type<tc>, window_params = [{transform_indices = @transform_0, window_bounds = array<i64: 8, 12, 32>}, {pipeline_mode = #tpu.pipeline_mode<synchronous>, transform_indices = @transform_1, window_bounds = array<i64: 288, 128>}, {pipeline_mode = #tpu.pipeline_mode<synchronous>, transform_indices = @transform_2, window_bounds = array<i64: 1, 128>}, {pipeline_mode = #tpu.pipeline_mode<synchronous>, transform_indices = @transform_3, window_bounds = array<i64: 128, 128>}, {pipeline_mode = #tpu.pipeline_mode<synchronous>, transform_indices = @transform_4, window_bounds = array<i64: 1, 128>}, {transform_indices = @transform_5, window_bounds = array<i64: 8, 128>}, {transform_indices = @transform_6, window_bounds = array<i64: 8, 128>}]} {
    %c0 = arith.constant 0 : index
    %c0_0 = arith.constant 0 : index
    %c0_1 = arith.constant 0 : index
    %0 = vector.load %arg1[%c0, %c0_0, %c0_1] : memref<8x12x32xbf16, #tpu.memory_space<vmem>>, vector<8x12x32xbf16>
    %1 = arith.extf %0 : vector<8x12x32xbf16> to vector<8x12x32xf32>
    %cst = arith.constant dense<0.000000e+00> : vector<8x32xf32>
    %2 = vector.multi_reduction <add>, %1, %cst [1] : vector<8x12x32xf32> to vector<8x32xf32>
    %3 = vector.extract_strided_slice %1 {offsets = [0, 0, 0], sizes = [8, 1, 32], strides = [1, 1, 1]} : vector<8x12x32xf32> to vector<8x1x32xf32>
    %4 = vector.shape_cast %3 : vector<8x1x32xf32> to vector<8x32xf32>
    %5 = vector.extract_strided_slice %1 {offsets = [0, 1, 0], sizes = [8, 1, 32], strides = [1, 1, 1]} : vector<8x12x32xf32> to vector<8x1x32xf32>
    %6 = vector.shape_cast %5 : vector<8x1x32xf32> to vector<8x32xf32>
    %7 = vector.extract_strided_slice %1 {offsets = [0, 2, 0], sizes = [8, 1, 32], strides = [1, 1, 1]} : vector<8x12x32xf32> to vector<8x1x32xf32>
    %8 = vector.shape_cast %7 : vector<8x1x32xf32> to vector<8x32xf32>
    %9 = vector.extract_strided_slice %1 {offsets = [0, 3, 0], sizes = [8, 1, 32], strides = [1, 1, 1]} : vector<8x12x32xf32> to vector<8x1x32xf32>
    %10 = vector.shape_cast %9 : vector<8x1x32xf32> to vector<8x32xf32>
    %11 = vector.extract_strided_slice %1 {offsets = [0, 8, 0], sizes = [8, 1, 32], strides = [1, 1, 1]} : vector<8x12x32xf32> to vector<8x1x32xf32>
    %12 = vector.shape_cast %11 : vector<8x1x32xf32> to vector<8x32xf32>
    %13 = vector.extract_strided_slice %1 {offsets = [0, 9, 0], sizes = [8, 1, 32], strides = [1, 1, 1]} : vector<8x12x32xf32> to vector<8x1x32xf32>
    %14 = vector.shape_cast %13 : vector<8x1x32xf32> to vector<8x32xf32>
    %15 = vector.extract_strided_slice %1 {offsets = [0, 10, 0], sizes = [8, 1, 32], strides = [1, 1, 1]} : vector<8x12x32xf32> to vector<8x1x32xf32>
    %16 = vector.shape_cast %15 : vector<8x1x32xf32> to vector<8x32xf32>
    %17 = vector.extract_strided_slice %1 {offsets = [0, 11, 0], sizes = [8, 1, 32], strides = [1, 1, 1]} : vector<8x12x32xf32> to vector<8x1x32xf32>
    %18 = vector.shape_cast %17 : vector<8x1x32xf32> to vector<8x32xf32>
    %19 = tpu.concatenate %2, %4, %6, %8, %10, %12, %14, %16, %18 in 1 : vector<8x32xf32>, vector<8x32xf32>, vector<8x32xf32>, vector<8x32xf32>, vector<8x32xf32>, vector<8x32xf32>, vector<8x32xf32>, vector<8x32xf32>, vector<8x32xf32> -> vector<8x288xf32>
    %c0_2 = arith.constant 0 : index
    %c0_3 = arith.constant 0 : index
    %20 = vector.load %arg2[%c0_2, %c0_3] : memref<288x128xf32, #tpu.memory_space<vmem>>, vector<288x128xf32>
    %cst_4 = arith.constant dense<0.000000e+00> : vector<8x128xf32>
    %21 = tpu.matmul %19, %20, %cst_4 {dimension_numbers = #tpu.dot_dimension_numbers<[1], [0], [0], [1], [0, 0, 1, 1], [], []>} : vector<8x288xf32>, vector<288x128xf32>, vector<8x128xf32> -> vector<8x128xf32>
    %c0_5 = arith.constant 0 : index
    %c0_6 = arith.constant 0 : index
    %22 = vector.load %arg3[%c0_5, %c0_6] : memref<1x128xf32, #tpu.memory_space<vmem>>, vector<1x128xf32>
    %23 = vector.broadcast %22 : vector<1x128xf32> to vector<8x128xf32>
    %24 = arith.addf %21, %23 : vector<8x128xf32>
    %cst_7 = arith.constant 0.000000e+00 : f32
    %25 = vector.broadcast %cst_7 : f32 to vector<8x128xf32>
    %26 = arith.maximumf %24, %25 : vector<8x128xf32>
    %c0_8 = arith.constant 0 : index
    %c0_9 = arith.constant 0 : index
    %27 = vector.load %arg7[%c0_8, %c0_9] : memref<8x128xf32, #tpu.memory_space<vmem>>, vector<8x128xf32>
    tpu.vector_store %arg7[%c0_8, %c0_9], %26 {strides = array<i32>} : memref<8x128xf32, #tpu.memory_space<vmem>>, vector<8x128xf32>,
    %c0_10 = arith.constant 0 : index
    %c0_11 = arith.constant 0 : index
    %28 = vector.load %arg4[%c0_10, %c0_11] : memref<128x128xf32, #tpu.memory_space<vmem>>, vector<128x128xf32>
    %cst_12 = arith.constant dense<0.000000e+00> : vector<8x128xf32>
    %29 = tpu.matmul %26, %28, %cst_12 {dimension_numbers = #tpu.dot_dimension_numbers<[1], [0], [0], [1], [0, 0, 1, 1], [], []>} : vector<8x128xf32>, vector<128x128xf32>, vector<8x128xf32> -> vector<8x128xf32>
    %c0_13 = arith.constant 0 : index
    %c0_14 = arith.constant 0 : index
    %30 = vector.load %arg5[%c0_13, %c0_14] : memref<1x128xf32, #tpu.memory_space<vmem>>, vector<1x128xf32>
    %31 = vector.broadcast %30 : vector<1x128xf32> to vector<8x128xf32>
    %32 = arith.addf %29, %31 : vector<8x128xf32>
    %c0_15 = arith.constant 0 : index
    %c0_16 = arith.constant 0 : index
    %33 = vector.load %arg6[%c0_15, %c0_16] : memref<8x128xf32, #tpu.memory_space<vmem>>, vector<8x128xf32>
    tpu.vector_store %arg6[%c0_15, %c0_16], %32 {strides = array<i32>} : memref<8x128xf32, #tpu.memory_space<vmem>>, vector<8x128xf32>,
    return
  }
  func.func @transform_0(%arg0: i32) -> (i32, i32, i32) {
    %c0_i32 = arith.constant 0 : i32
    %c0_i32_0 = arith.constant 0 : i32
    %c0_i32_1 = arith.constant 0 : i32
    return %arg0, %c0_i32, %c0_i32_0 : i32, i32, i32
  }
  func.func @transform_1(%arg0: i32) -> (i32, i32) {
    %c0_i32 = arith.constant 0 : i32
    %c0_i32_0 = arith.constant 0 : i32
    %c0_i32_1 = arith.constant 0 : i32
    return %c0_i32, %c0_i32_0 : i32, i32
  }
  func.func @transform_2(%arg0: i32) -> (i32, i32) {
    %c0_i32 = arith.constant 0 : i32
    %c0_i32_0 = arith.constant 0 : i32
    %c0_i32_1 = arith.constant 0 : i32
    return %c0_i32, %c0_i32_0 : i32, i32
  }
  func.func @transform_3(%arg0: i32) -> (i32, i32) {
    %c0_i32 = arith.constant 0 : i32
    %c0_i32_0 = arith.constant 0 : i32
    %c0_i32_1 = arith.constant 0 : i32
    return %c0_i32, %c0_i32_0 : i32, i32
  }
  func.func @transform_4(%arg0: i32) -> (i32, i32) {
    %c0_i32 = arith.constant 0 : i32
    %c0_i32_0 = arith.constant 0 : i32
    %c0_i32_1 = arith.constant 0 : i32
    return %c0_i32, %c0_i32_0 : i32, i32
  }
  func.func @transform_5(%arg0: i32) -> (i32, i32) {
    %c0_i32 = arith.constant 0 : i32
    %c0_i32_0 = arith.constant 0 : i32
    return %arg0, %c0_i32 : i32, i32
  }
  func.func @transform_6(%arg0: i32) -> (i32, i32) {
    %c0_i32 = arith.constant 0 : i32
    %c0_i32_0 = arith.constant 0 : i32
    return %arg0, %c0_i32 : i32, i32
  }
}

</mosaic_0001>

<bundles_post_ra>
// kernel: tpu_custom_call.1
= control target key start
LH: loop header
LB: loop body
LE: loop exit
PB: predicated region body
PF: predicated region fallthrough
CT: control target
= control target key end

     0   :  { %12 = vsyncpa [#allocation3], 0  ;;  %s1950_s0 = inlined_call_operand.vmem [shape: bf16[16,12,32], index: 0, kind: input, shape index: {}]   ;;  %s1951_s1 = inlined_call_operand.hbm [shape: f32[288,128], index: 1, kind: input, shape index: {}]   ;;  %s1952_s2 = inlined_call_operand.vmem [shape: f32[1,128], index: 2, kind: input, shape index: {}]   ;;  %s1953_s3 = inlined_call_operand.vmem [shape: f32[128,128], index: 3, kind: input, shape index: {}]   ;;  %s1954_s4 = inlined_call_operand.vmem [shape: f32[1,128], index: 4, kind: input, shape index: {}]   ;;  %s1955_s5 = inlined_call_operand.hbm [shape: f32[16,128], index: 5, kind: output, shape index: {0}]   ;;  %s1956_s6 = inlined_call_operand.hbm [shape: f32[16,128], index: 6, kind: output, shape index: {1}]  }
   0x1   :  { %13 = vsyncpa [#allocation4], 0 }
   0x2   :  { %15 = vsyncpa [#allocation4 + $0x1], 0 }
   0x3   :  { %16 = vsyncpa [#allocation7], 0 }
   0x4   :  { %18 = vsyncpa [#allocation7 + $0x1], 0  ;;  %s1419_s21 = smov 0   ;;  %s1421_s22 = smov 0  }
   0x5   :  { %s1423_s23 = smov 0   ;;  %s1425_s24 = smov 0  }
   0x6 LB: > { %s1440_s25 = sadd.s32 4294967295, %s1371_s24   ;;  %s981_s26 = sadd.s32 4294967294, %s1371_s24   ;;  %s1371_s24 = sphi %s1425_s24, %s1972_s24   ;;  %s1367_s23 = sphi %s1423_s23, %s1971_s23   ;;  %s1363_s22 = sphi %s1421_s22, %s1970_s22   ;;  %s1359_s21 = sphi %s1419_s21, %s1969_s21  }
   0x7   : > { %s1444_s27 = sadd.s32 1, %s1371_s24   ;;  %s141_s28 = sadd.s32 1, %s1367_s23 }
   0x8   : > { %s138_s29 = ssub.s32 %s1371_s24, %s1444_s27  ;;  %p151_p0 = scmp.ne.s32.totalorder %s1367_s23, %s1363_s22 }
   0x9   : > { %p139_p1 = scmp.eq.s32.totalorder %s138_s29, 0  ;;  %p152_p2 = scmp.eq.s32.totalorder %s1440_s25, 1 }
   0xa   : > { %p157_p3 = scmp.ne.s32.totalorder %s1363_s22, %s1359_s21  ;;  %p158_p4 = scmp.eq.s32.totalorder %s981_s26, 1 }
   0xb   : > { %s1455_s30 = scalar_select %p139_p1, %s1367_s23, %s141_s28  }
   0xc   : > { %p1457_p5 = por %p152_p2, %p151_p0  ;;  %p1461_p6 = por %p158_p4, %p157_p3 }
   0xd   : > { %p982_p7 = scmp.ge.s32.totalorder %s1371_s24, 1  ;;  %p191_p8 = scmp.lt.s32.totalorder %s1371_s24, 3 }
   0xe   : > { %s1960_s7 = scalar_select %p1457_p5, 1, 0 }
   0xf   : > { %s1961_s8 = scalar_select %p1461_p6, 1, 0 }
  0x10   : > { %p1957_p9 = scmp.eq.s32.totalorder %s1440_s25, 0  ;;  %p1468_p10 = pnand %p982_p7, %p191_p8 }
  0x11   : > { %s1373_s10 = smov [#allocation2]   ;;  %s1245_s15 = scalar_lea.hbm %s1951_s1, 4608 }
  0x12   : > { %s1962_s9 = scalar_select %p1468_p10, 1, 0 }
  0x13   : > { %s203_s11 = sshll.u32 %s1373_s10, 4  ;;  %p1175_p11 = pneg %p1468_p10  ;;  %s204_s11 = int_to_ptr.vmem [resolvable:$true] %s203_s11 }
  0x14   : > { %p1246_p13 = scmp.ne.s32.totalorder %s1951_s1, %s1245_s15  ;;  %p1252_p3 = scmp.lt.u32.totalorder %s1245_s15, %s1951_s1 }
  0x15   : > { %p1476_p12 = pnand %p1957_p9, %p1175_p11 }
  0x17   : > { %p1247_p0 = pneg %p1476_p12 }
  0x19   : > { %p1248_p1 = pnand %p1247_p0, %p1246_p13 }
  0x1b   : > { %p1249_p2 = pneg %p1248_p1 }
  0x1d   : > { %p1254_p4 = pnand %p1252_p3, %p1249_p2 }
  0x1f   : > { %1257 = shalt.err (!%p1254_p4)
}
  0x20   : > { %s1258_s20 = scalar_lea.vmem %s204_s11, 4608  ;;  %p1266_p9 = scmp.lt.s32.totalorder %s204_s11, %s204_s11 }
  0x21   : > { %p1259_p7 = scmp.ne.s32.totalorder %s204_s11, %s1258_s20  ;;  %p1267_p6 = scmp.lt.s32.totalorder %s1258_s20, %s1258_s20 }
  0x23   : > { %p1261_p8 = pnand %p1259_p7, %p1247_p0  ;;  %p1268_p5 = por %p1267_p6, %p1266_p9 }
  0x25   : > { %p1262_p11 = pneg %p1261_p8 }
  0x27   : > { %p1269_p10 = pnand %p1268_p5, %p1262_p11 }
  0x29   : > { %1272 = shalt.err (!%p1269_p10)
}
  0x2a   : > { %s1374_s26 = smov 128   ;;  %s1375_s28 = smov 8  }
  0x2b   : > { %1178 = dma.hbm_to_vmem [thread:$0]  (!%p1476_p12), %s1951_s1, 4608, %s204_s11, [#allocation3], %s1374_s26, %s1374_s26, %s1375_s28  }
  0x2c   : > { %p1964_p13 = scmp.ne.s32.totalorder %s1962_s9, 0 }
  0x2d   : > { %p1965_p1 = scmp.eq.s32.totalorder (!%p1964_p13), %s1440_s25, 0 }
  0x2e   : > { %238 = sbr.rel (%p1964_p13) target bundleno = 660 (0x294), region = 40 }
  0x35   : > { %1346 = dma.done.wait (%p1965_p1), [#allocation3], 4608   ;;  %p1966_p0 = pmov %p1965_p1 }
  0x36   : > { %s989_s13 = sshll.u32 %s1440_s25, 3  ;;  %vm395_vm0 = vcmask 1041409   ;;  %vm397_vm1 = vcmask 1042434   ;;  %vm399_vm2 = vcmask 1043459   ;;  %vm401_vm3 = vcmask 1044484   ;;  %s1376_s9 = smov 32  }
  0x37   : > { %1348 = vsyncadd (%p1966_p0), [#allocation3], 4294962688  ;;  %p275_p5 = scmp.lt.s32.totalorder %s989_s13, 15  ;;  %vm403_vm4 = vcmask 1045509   ;;  %vm405_vm5 = vcmask 1046534   ;;  %vm407_vm6 = vcmask 1047559  }
  0x38   : > { %s1377_s11 = smov 64   ;;  %vm313_vm7 = vcmask 261120   ;;  %vm315_vm8 = vcmask 257024   ;;  %s1379_s17 = smov 96   ;;  %vm1380_vm9 = vmmov 0   ;;  %vm558_vm10 = vcmask 523264  }
  0x39   : > { %s1974_s13 = smov (!%p275_p5, %s989_s13), 15  ;;  %vm560_vm11 = vcmask 785408   ;;  %s1863_s20 = sand.u32 1, %s1363_s22  }
  0x3a   : > { %s1001_s14 = sshll.u32 %s1974_s13, 3  ;;  %s987_s29 = sshll.u32 %s1863_s20, 3 }
  0x3b   : > { %s279_s16 = scalar_lea.vmem %s1950_s0, %s1001_s14  ;;  %s273_s10 = scalar_lea.vmem [#allocation6], %s987_s29 }
  0x3c   : > { %v281_v0 = vld [vmem:[%s279_s16] ss:$8 sps:$4 sm:$0xff]   ;;  %v282_v1 = vld [vmem:[%s279_s16 + $0x4] sm:$0x3]  ;;  %v284_v2 = vld [vmem:[%s279_s16 + $0xc] sm:$0x3] }
  0x3d   : > { %v285_v3 = vld [vmem:[%s279_s16 + $0x10] ss:$8 sps:$4 sm:$0xff]   ;;  %v286_v4 = vld [vmem:[%s279_s16 + $0x14] sm:$0x3]  ;;  %v288_v5 = vld [vmem:[%s279_s16 + $0x1c] sm:$0x3]  ;;  %v1506_v6 = vunpack.c.l.bf16 %v281_v0  ;;  %v1508_v7 = vunpack.c.l.bf16 %v282_v1  ;;  %v1510_v8 = vunpack.c.h.bf16 %v281_v0  ;;  %v1512_v9 = vunpack.c.l.bf16 %v284_v2 }
  0x3e   : > { %v289_v10 = vld [vmem:[%s279_s16 + $0x20] ss:$8 sps:$4 sm:$0xff]   ;;  %v290_v11 = vld [vmem:[%s279_s16 + $0x24] sm:$0x3]  ;;  %v292_v12 = vld [vmem:[%s279_s16 + $0x2c] sm:$0x3]  ;;  %v1514_v13 = vunpack.c.l.bf16 %v285_v3  ;;  %v1516_v14 = vunpack.c.l.bf16 %v286_v4  ;;  %v1518_v15 = vunpack.c.h.bf16 %v285_v3  ;;  %v1520_v16 = vunpack.c.l.bf16 %v288_v5 }
  0x3f   : > { %v293_v17 = vld [vmem:[%s279_s16 + $0x30] ss:$8 sps:$4 sm:$0xff]   ;;  %v294_v18 = vld [vmem:[%s279_s16 + $0x34] sm:$0x3]  ;;  %v296_v19 = vld [vmem:[%s279_s16 + $0x3c] sm:$0x3]  ;;  %v1522_v20 = vunpack.c.l.bf16 %v289_v10  ;;  %v1524_v21 = vunpack.c.l.bf16 %v290_v11  ;;  %v1526_v22 = vunpack.c.h.bf16 %v289_v10  ;;  %v1528_v23 = vunpack.c.l.bf16 %v292_v12 }
  0x40   : > { %v1530_v24 = vunpack.c.l.bf16 %v293_v17  ;;  %v1532_v25 = vunpack.c.l.bf16 %v294_v18  ;;  %v1534_v26 = vunpack.c.h.bf16 %v293_v17  ;;  %v1536_v27 = vunpack.c.l.bf16 %v296_v19  ;;  %s997_s13 = sshll.u32 %s1440_s25, 7  ;;  %s878_s16 = sshll.u32 %s273_s10, 4  ;;  %s879_s16 = int_to_ptr.vmem [resolvable:$true] %s878_s16 }
  0x41   : > { %v418_v28 = vrot.slane %v1510_v8, 7  ;;  %v420_v29 = vrot.slane %v1514_v13, 6  ;;  %v422_v30 = vrot.slane %v1518_v15, 5  ;;  %v424_v31 = vrot.slane %v1522_v20, 4  ;;  %s1877_s12 = scalar_lea.hbm %s1956_s6, %s997_s13  ;;  %p1967_p9 = scmp.ne.s32.totalorder %s1960_s7, 0 }
  0x42   : > { %v426_v32 = vrot.slane %v1526_v22, 3  ;;  %v428_v33 = vrot.slane %v1530_v24, 2  ;;  %v430_v34 = vrot.slane %v1534_v26, 1  ;;  %v492_v35 = vrot.slane %v1512_v9, 7 }
  0x43   : > { %v419_v36 = vsel %vm395_vm0, %v418_v28, %v1506_v6  ;;  %v494_v37 = vrot.slane %v1516_v14, 6  ;;  %v496_v38 = vrot.slane %v1520_v16, 5  ;;  %v498_v39 = vrot.slane %v1524_v21, 4 }
  0x44   : > { %v421_v40 = vsel %vm397_vm1, %v420_v29, %v419_v36  ;;  %v493_v41 = vsel %vm395_vm0, %v492_v35, %v1508_v7  ;;  %v500_v42 = vrot.slane %v1528_v23, 3  ;;  %v502_v43 = vrot.slane %v1532_v25, 2 }
  0x45   : > { %v423_v44 = vsel %vm399_vm2, %v422_v30, %v421_v40  ;;  %v495_v45 = vsel %vm397_vm1, %v494_v37, %v493_v41  ;;  %v504_v46 = vrot.slane %v1536_v27, 1  ;;  %v435_v47 = vrot.slane %v1506_v6, 1 }
  0x46   : > { %v425_v48 = vsel %vm401_vm3, %v424_v31, %v423_v44  ;;  %v497_v49 = vsel %vm399_vm2, %v496_v38, %v495_v45  ;;  %v437_v50 = vrot.slane %v1514_v13, 7  ;;  %v439_v51 = vrot.slane %v1518_v15, 6  ;;  %v581_v44 = vld [vmem:[#allocation2 + $0x80] sm:$0xff]  ;;  %v582_v45 = vld [vmem:[#allocation2 + $0x88] sm:$0xff] }
  0x47   : > { %v427_v52 = vsel %vm403_vm4, %v426_v32, %v425_v48  ;;  %v499_v53 = vsel %vm401_vm3, %v498_v39, %v497_v49  ;;  %v436_v54 = vsel %vm395_vm0, %v1510_v8, %v435_v47  ;;  %v441_v55 = vrot.slane %v1522_v20, 5 }
  0x48   : > { %v429_v56 = vsel %vm405_vm5, %v428_v33, %v427_v52  ;;  %v501_v57 = vsel %vm403_vm4, %v500_v42, %v499_v53  ;;  %v438_v58 = vsel %vm397_vm1, %v437_v50, %v436_v54  ;;  %v443_v59 = vrot.slane %v1526_v22, 4  ;;  %v583_v52 = vld [vmem:[#allocation2 + $0x90] sm:$0xff]  ;;  %v584_v53 = vld [vmem:[#allocation2 + $0x98] sm:$0xff] }
  0x49   : > { %v431_v60 = vsel %vm407_vm6, %v430_v34, %v429_v56  ;;  %v503_v61 = vsel %vm405_vm5, %v502_v43, %v501_v57  ;;  %v440_v62 = vsel %vm399_vm2, %v439_v51, %v438_v58  ;;  %v445_v63 = vrot.slane %v1530_v24, 3  ;;  %v566_v51 = vld [vmem:[#allocation2 + $0x8] sm:$0xff]  ;;  %v1614_v58 = vld [vmem:[#allocation2 + $0x10] sm:$0xff] }
  0x4a   : > { %v505_v0 = vsel %vm407_vm6, %v504_v46, %v503_v61  ;;  %v442_v1 = vsel %vm401_vm3, %v441_v55, %v440_v62  ;;  %v447_v2 = vrot.slane %v1534_v26, 2  ;;  %v509_v3 = vrot.slane %v1508_v7, 1  ;;  %v565_v46 = vld [vmem:[#allocation2] sm:$0xff]  ;;  %v1620_v61 = vld [vmem:[#allocation2 + $0xa8] sm:$0xff] }
  0x4b   : > { %v1230_v4 = vpack.i.bf16 %v431_v60, %v505_v0  ;;  %v444_v5 = vsel %vm403_vm4, %v443_v59, %v442_v1  ;;  %v511_v10 = vrot.slane %v1516_v14, 7  ;;  %v513_v11 = vrot.slane %v1520_v16, 6  ;;  %v1616_v59 = vld [vmem:[#allocation2 + $0x18] sm:$0xff]  ;;  %v1618_v60 = vld [vmem:[#allocation2 + $0xa0] sm:$0xff] }
  0x4c   : > { %v446_v12 = vsel %vm405_vm5, %v445_v63, %v444_v5  ;;  %v510_v17 = vsel %vm395_vm0, %v1512_v9, %v509_v3  ;;  %v515_v18 = vrot.slane %v1524_v21, 5  ;;  %v517_v19 = vrot.slane %v1528_v23, 4  ;;  %v1622_v62 = vld [vmem:[#allocation2 + $0x20] sm:$0xff]  ;;  %v1624_v63 = vld [vmem:[#allocation2 + $0x28] sm:$0xff]  ;;  %v1631_v5 = vld [vmem:[#allocation2 + $0xb8] sm:$0xff] }
  0x4d   : > { %1231 = vrot.lane.b32.xlu0 %v1230_v4, %s1376_s9  ;;  %v448_v28 = vsel %vm407_vm6, %v447_v2, %v446_v12  ;;  %v512_v29 = vsel %vm397_vm1, %v511_v10, %v510_v17  ;;  %v519_v30 = vrot.slane %v1532_v25, 3  ;;  %v521_v31 = vrot.slane %v1536_v27, 2  ;;  %v1629_v4 = vld [vmem:[#allocation2 + $0xb0] sm:$0xff]  ;;  %s852_s9 = scalar_lea.sflag [#allocation7], %s1863_s20 }
  0x4e   : > { %v514_v32 = vsel %vm399_vm2, %v513_v11, %v512_v29  ;;  %v452_v33 = vrot.slane %v1506_v6, 2  ;;  %v453_v34 = vrot.slane %v1510_v8, 1  ;;  %v456_v35 = vrot.slane %v1518_v15, 7  ;;  %v1633_v10 = vld [vmem:[#allocation2 + $0x30] sm:$0xff]  ;;  %v1635_v11 = vld [vmem:[#allocation2 + $0x38] sm:$0xff]  ;;  %v1643_v29 = vld [vmem:[#allocation2 + $0xc8] sm:$0xff] }
  0x4f   : > { %v516_v36 = vsel %vm401_vm3, %v515_v18, %v514_v32  ;;  %v458_v37 = vrot.slane %v1522_v20, 6  ;;  %v460_v38 = vrot.slane %v1526_v22, 5  ;;  %v462_v39 = vrot.slane %v1530_v24, 4 }
  0x50   : > { %v518_v40 = vsel %vm403_vm4, %v517_v19, %v516_v36  ;;  %v454_v41 = vsel %vm395_vm0, %v453_v34, %v452_v33  ;;  %v464_v42 = vrot.slane %v1534_v26, 3  ;;  %v526_v43 = vrot.slane %v1508_v7, 2  ;;  %v1651_v36 = vld [vmem:[#allocation2 + $0xd0] sm:$0xff] }
  0x51   : > { %v520_v47 = vsel %vm405_vm5, %v519_v30, %v518_v40  ;;  %v455_v48 = vsel %vm397_vm1, %v1514_v13, %v454_v41  ;;  %v527_v49 = vrot.slane %v1512_v9, 1  ;;  %v530_v50 = vrot.slane %v1520_v16, 7  ;;  %v1645_v30 = vld [vmem:[#allocation2 + $0x40] sm:$0xff]  ;;  %v1657_v41 = vld [vmem:[#allocation2 + $0x50] sm:$0xff] }
  0x52   : > { %v522_v54 = vsel %vm407_vm6, %v521_v31, %v520_v47  ;;  %v457_v55 = vsel %vm399_vm2, %v456_v35, %v455_v48  ;;  %v532_v56 = vrot.slane %v1524_v21, 6  ;;  %v534_v57 = vrot.slane %v1528_v23, 5  ;;  %v1649_v35 = vld [vmem:[#allocation2 + $0x48] sm:$0xff]  ;;  %v1672_v48 = vld [vmem:[#allocation2 + $0x60] sm:$0xff] }
  0x53   : > { %v1235_v0 = vpack.i.bf16 %v448_v28, %v522_v54  ;;  %v459_v1 = vsel %vm401_vm3, %v458_v37, %v457_v55  ;;  %v528_v2 = vsel %vm395_vm0, %v527_v49, %v526_v43  ;;  %v536_v3 = vrot.slane %v1532_v25, 4  ;;  %v1641_v28 = vld [vmem:[#allocation2 + $0xc0] sm:$0xff]  ;;  %v1653_v37 = vld [vmem:[#allocation2 + $0xd8] sm:$0xff]  ;;  %v1670_v47 = vld [vmem:[#allocation2 + $0xe8] sm:$0xff] }
  0x54   : > { %v461_v12 = vsel %vm403_vm4, %v460_v38, %v459_v1  ;;  %v529_v17 = vsel %vm397_vm1, %v1516_v14, %v528_v2  ;;  %v538_v18 = vrot.slane %v1536_v27, 3  ;;  %v1105_v19 = vpack.c.bf16 %v582_v45, %v581_v44  ;;  %v1659_v43 = vld [vmem:[#allocation2 + $0x58] sm:$0xff]  ;;  %v1674_v49 = vld [vmem:[#allocation2 + $0x68] sm:$0xff]  ;;  %v1683_v54 = vld [vmem:[#allocation2 + $0xf0] sm:$0xff] }
  0x55   : > { %1236 = vrot.lane.b32.xlu0 %v1235_v0, %s1377_s11  ;;  %v463_v31 = vsel %vm405_vm5, %v462_v39, %v461_v12  ;;  %v531_v32 = vsel %vm399_vm2, %v530_v50, %v529_v17  ;;  %v1107_v33 = vpack.c.bf16 %v566_v51, %v565_v46  ;;  %v1109_v34 = vpack.c.bf16 %v584_v53, %v583_v52  ;;  %v1661_v39 = vld [vmem:[#allocation2 + $0xe0] sm:$0xff]  ;;  %s1273_s11 = scalar_lea.vmem %s879_s16, 128 }
  0x56   : > { %v465_v38 = vsel %vm407_vm6, %v464_v42, %v463_v31  ;;  %v533_v40 = vsel %vm401_vm3, %v532_v56, %v531_v32  ;;  %1106 = vmatprep.subr.bf16.mxu0 %v1105_v19  ;;  %v1111_v45 = vpack.c.bf16 %v1616_v59, %v1614_v58  ;;  %v1113_v42 = vpack.c.bf16 %v1620_v61, %v1618_v60  ;;  %v597_v55 = vld [vmem:[#allocation2 + $0x100] sm:$0xff]  ;;  %v598_v56 = vld [vmem:[#allocation2 + $0x108] sm:$0xff]  ;;  %v1692_v61 = vld [vmem:[#allocation2 + $0xf8] sm:$0xff]  ;;  %p1274_p6 = scmp.ne.s32.totalorder %s879_s16, %s1273_s11 }
  0x57   : > { %v535_v44 = vsel %vm403_vm4, %v534_v57, %v533_v40  ;;  %1108 = vmatpush3.bf16.msra.mxu0 %v1107_v33  ;;  %v1115_v46 = vpack.c.bf16 %v1624_v63, %v1622_v62  ;;  %v1117_v51 = vpack.c.bf16 %v1631_v5, %v1629_v4  ;;  %v1119_v52 = vpack.c.bf16 %v1635_v11, %v1633_v10  ;;  %v1694_v62 = vld [vmem:[#allocation2 + $0x70] sm:$0xff]  ;;  %v1696_v63 = vld [vmem:[#allocation2 + $0x78] sm:$0xff] }
  0x58   : > { %v537_v50 = vsel %vm405_vm5, %v536_v3, %v535_v44  ;;  %1110 = vmatprep.subr.bf16.mxu0 %v1109_v34  ;;  %v1121_v53 = vpack.c.bf16 %v1643_v29, %v1641_v28  ;;  %v1123_v58 = vpack.c.bf16 %v1649_v35, %v1645_v30  ;;  %v1125_v59 = vpack.c.bf16 %v1653_v37, %v1651_v36  ;;  %p1275_p10 = pnand %p1274_p6, %p1967_p9 }
  0x59   : > { %v539_v57 = vsel %vm407_vm6, %v538_v18, %v537_v50  ;;  %v1127_v60 = vpack.c.bf16 %v1659_v43, %v1657_v41  ;;  %v1129_v1 = vpack.c.bf16 %v1670_v47, %v1661_v39  ;;  %v1131_v2 = vpack.c.bf16 %v1674_v49, %v1672_v48 }
  0x5a   : > { %v1240_v0 = vpack.i.bf16 %v465_v38, %v539_v57  ;;  %v1378_v3 = vmov 0.0|0.0   ;;  %v1138_v4 = vpack.c.bf16 %v598_v56, %v597_v55  ;;  %v469_v5 = vrot.slane %v1506_v6, 3  ;;  %p1276_p12 = pneg %p1275_p10 }
  0x5b   : > { %1112 = vmatpush3.bf16.msra.mxu0 %v1111_v45  ;;  %1137 = vmatprep.subr.bf16.mxu1 %v1378_v3  ;;  %v470_v10 = vrot.slane %v1510_v8, 2  ;;  %v472_v11 = vrot.slane %v1514_v13, 1  ;;  %v1133_v12 = vpack.c.bf16 %v1692_v61, %v1683_v54  ;;  %v1135_v17 = vpack.c.bf16 %v1696_v63, %v1694_v62  ;;  %v753_v62 = vld [vmem:[%s1953_s3 + $0x8] sm:$0xff] }
  0x5c   : > { %1241 = vrot.lane.b32.xlu1 %v1240_v0, %s1379_s17  ;;  %1114 = vmatprep.subr.bf16.mxu0 %v1113_v42  ;;  %v475_v18 = vrot.slane %v1522_v20, 7  ;;  %v477_v19 = vrot.slane %v1526_v22, 6  ;;  %v479_v29 = vrot.slane %v1530_v24, 5  ;;  %v481_v31 = vrot.slane %v1534_v26, 4  ;;  %s1382_s17 = smov [#allocation6]  }
  0x5d   : > { %1139 = vmatpush3.bf16.msra.mxu1 %v1138_v4  ;;  %v471_v28 = vsel %vm395_vm0, %v470_v10, %v469_v5  ;;  %v314_v32 = vsel %vm313_vm7, %v1506_v6, 0.0  ;;  %v316_v34 = vsel %vm315_vm8, %v1508_v7, 0.0  ;;  %v324_v38 = vsel %vm313_vm7, %v1510_v8, 0.0  ;;  %s1277_s18 = sshll.u32 %s1382_s17, 4  ;;  %s1278_s18 = int_to_ptr.vmem [resolvable:$false] %s1277_s18 }
  0x5e   : > { %v473_v33 = vsel %vm397_vm1, %v472_v11, %v471_v28  ;;  %v325_v40 = vsel %vm315_vm8, %v1512_v9, 0.0  ;;  %1140 = vmatprep.subr.bf16.mxu1 %v1378_v3  ;;  %v317_v45 = vadd.f32 %v316_v34, %v314_v32  ;;  %v333_v6 = vsel %vm313_vm7, %v1514_v13, 0.0  ;;  %s1279_s19 = scalar_lea.vmem %s1278_s18, 256  ;;  %p1280_p2 = scmp.lt.s32.totalorder %s879_s16, %s1278_s18 }
  0x5f   : > { %1116 = vmatpush3.bf16.msra.mxu0 %v1115_v46  ;;  %v474_v44 = vsel %vm399_vm2, %v1518_v15, %v473_v33  ;;  %v326_v42 = vadd.f32 %v325_v40, %v324_v38  ;;  %v334_v8 = vsel %vm315_vm8, %v1516_v14, 0.0  ;;  %v342_v55 = vsel %vm313_vm7, %v1518_v15, 0.0  ;;  %p1281_p3 = scmp.lt.s32.totalorder %s1279_s19, %s1273_s11 }
  0x60   : > { %1118 = vmatprep.subr.bf16.mxu0 %v1117_v51  ;;  %v476_v50 = vsel %vm401_vm3, %v475_v18, %v474_v44  ;;  %v343_v46 = vsel %vm315_vm8, %v1520_v16, 0.0  ;;  %v318_v57 = vrot.slane %v317_v45, 4  ;;  %v335_v4 = vadd.f32 %v334_v8, %v333_v6 }
  0x61   : > { %v478_v56 = vsel %vm403_vm4, %v477_v19, %v476_v50  ;;  %v327_v0 = vrot.slane %v326_v42, 4  ;;  %v344_v13 = vadd.f32 %v343_v46, %v342_v55  ;;  %v351_v51 = vsel %vm313_vm7, %v1522_v20, 0.0  ;;  %p1282_p4 = por %p1281_p3, %p1280_p2 }
  0x62   : > { %v480_v5 = vsel %vm405_vm5, %v479_v29, %v478_v56  ;;  %v352_v10 = vsel %vm315_vm8, %v1524_v21, 0.0  ;;  %v319_v11 = vadd.f32 %v318_v57, %v317_v45  ;;  %v336_v28 = vrot.slane %v335_v4, 4 }
  0x63   : > { %1120 = vmatpush3.bf16.msra.mxu0 %v1119_v52  ;;  %v1743_v15 = vsel %vm407_vm6, %v481_v31, %v480_v5  ;;  %v328_v18 = vadd.f32 %v327_v0, %v326_v42  ;;  %v345_v19 = vrot.slane %v344_v13, 4  ;;  %v353_v32 = vadd.f32 %v352_v10, %v351_v51  ;;  %v599_v5 = vld [vmem:[#allocation2 + $0x110] sm:$0xff]  ;;  %p1283_p7 = pnand %p1282_p4, %p1276_p12 }
  0x64   : > { %1122 = vmatprep.subr.bf16.mxu0 %v1121_v53  ;;  %v360_v29 = vsel %vm313_vm7, %v1526_v22, 0.0  ;;  %v361_v33 = vsel %vm315_vm8, %v1528_v23, 0.0  ;;  %v320_v20 = vrot.slane %v319_v11, 2  ;;  %v337_v38 = vadd.f32 %v336_v28, %v335_v4 }
  0x65   : > { %v329_v34 = vrot.slane %v328_v18, 2  ;;  %v362_v40 = vadd.f32 %v361_v33, %v360_v29  ;;  %v346_v52 = vadd.f32 %v345_v19, %v344_v13  ;;  %v354_v44 = vrot.slane %v353_v32, 4  ;;  %v600_v13 = vld [vmem:[#allocation2 + $0x118] sm:$0xff] }
  0x66   : > { %v369_v31 = vsel %vm313_vm7, %v1530_v24, 0.0  ;;  %v370_v53 = vsel %vm315_vm8, %v1532_v25, 0.0  ;;  %v321_v22 = vadd.f32 %v320_v20, %v319_v11  ;;  %v338_v42 = vrot.slane %v337_v38, 2 }
  0x67   : > { %1124 = vmatpush3.bf16.msra.mxu0 %v1123_v58  ;;  %v330_v45 = vadd.f32 %v329_v34, %v328_v18  ;;  %v363_v6 = vrot.slane %v362_v40, 4  ;;  %v347_v50 = vrot.slane %v346_v52, 2  ;;  %v355_v8 = vadd.f32 %v354_v44, %v353_v32 }
  0x68   : > { %1126 = vmatprep.subr.bf16.mxu0 %v1125_v59  ;;  %v371_v55 = vadd.f32 %v370_v53, %v369_v31  ;;  %v378_v24 = vsel %vm313_vm7, %v1534_v26, 0.0  ;;  %v322_v46 = vrot.slane %v321_v22, 1  ;;  %v339_v57 = vadd.f32 %v338_v42, %v337_v38 }
  0x69   : > { %v331_v56 = vrot.slane %v330_v45, 1  ;;  %v364_v0 = vadd.f32 %v363_v6, %v362_v40  ;;  %v348_v30 = vadd.f32 %v347_v50, %v346_v52  ;;  %v356_v35 = vrot.slane %v355_v8, 2 }
  0x6a   : > { %v372_v58 = vrot.slane %v371_v55, 4  ;;  %v379_v4 = vsel %vm315_vm8, %v1536_v27, 0.0  ;;  %v323_v36 = vadd.f32 %v322_v46, %v321_v22  ;;  %v340_v59 = vrot.slane %v339_v57, 1 }
  0x6b   : > { %1128 = vmatpush3.bf16.msra.mxu0 %v1127_v60  ;;  %v332_v37 = vadd.f32 %v331_v56, %v330_v45  ;;  %v365_v26 = vrot.slane %v364_v0, 2  ;;  %v349_v51 = vrot.slane %v348_v30, 1  ;;  %v357_v10 = vadd.f32 %v356_v35, %v355_v8  ;;  %v758_v35 = vld [vmem:[%s1953_s3 + $0x30] sm:$0xff] }
  0x6c   : > { %1130 = vmatprep.subr.bf16.mxu0 %v1129_v1  ;;  %v373_v11 = vadd.f32 %v372_v58, %v371_v55  ;;  %v380_v18 = vadd.f32 %v379_v4, %v378_v24  ;;  %v341_v28 = vadd.f32 %v340_v59, %v339_v57  ;;  %v1141_v29 = vpack.c.bf16 %v600_v13, %v599_v5  ;;  %v754_v24 = vld [vmem:[%s1953_s3 + $0x10] sm:$0xff]  ;;  %v756_v57 = vld [vmem:[%s1953_s3 + $0x20] sm:$0xff]  ;;  %v759_v58 = vld [vmem:[%s1953_s3 + $0x38] sm:$0xff] }
  0x6d   : > { %v366_v19 = vadd.f32 %v365_v26, %v364_v0  ;;  %v396_v32 = vsel %vm395_vm0, %v332_v37, %v323_v36  ;;  %v350_v33 = vadd.f32 %v349_v51, %v348_v30  ;;  %v358_v41 = vrot.slane %v357_v10, 1  ;;  %v757_v0 = vld [vmem:[%s1953_s3 + $0x28] sm:$0xff]  ;;  %v760_v5 = vld [vmem:[%s1953_s3 + $0x40] sm:$0xff]  ;;  %v762_v37 = vld [vmem:[%s1953_s3 + $0x50] sm:$0xff] }
  0x6e   : > { %v374_v43 = vrot.slane %v373_v11, 2  ;;  %v381_v60 = vrot.slane %v380_v18, 4  ;;  %v398_v39 = vsel %vm397_vm1, %v341_v28, %v396_v32  ;;  %1142 = vmatpush3.bf16.msra.mxu1 %v1141_v29  ;;  %v1381_v52 = vmov 0.0   ;;  %v761_v13 = vld [vmem:[%s1953_s3 + $0x48] sm:$0xff]  ;;  %v763_v59 = vld [vmem:[%s1953_s3 + $0x58] sm:$0xff] }
  0x6f   : > { %1132 = vmatpush3.bf16.msra.mxu0 %v1131_v2  ;;  %v367_v20 = vrot.slane %v366_v19, 1  ;;  %v359_v47 = vadd.f32 %v358_v41, %v357_v10  ;;  %v400_v38 = vsel %vm399_vm2, %v350_v33, %v398_v39  ;;  %1067 = vmatprep.mubr.msk.f32.mxu1 %vm1380_vm9, %v1381_v52  ;;  %v543_v48 = vrot.slane %v1508_v7, 3 }
  0x70   : > { %1134 = vmatprep.subr.bf16.mxu0 %v1133_v12  ;;  %v375_v1 = vadd.f32 %v374_v43, %v373_v11  ;;  %v382_v34 = vadd.f32 %v381_v60, %v380_v18  ;;  %v544_v49 = vrot.slane %v1512_v9, 2  ;;  %v546_v2 = vrot.slane %v1516_v14, 1  ;;  %1143 = vmatprep.subr.bf16.mxu1 %v1378_v3 }
  0x71   : > { %v368_v40 = vadd.f32 %v367_v20, %v366_v19  ;;  %v402_v12 = vsel %vm401_vm3, %v359_v47, %v400_v38  ;;  %v549_v44 = vrot.slane %v1524_v21, 7  ;;  %v551_v9 = vrot.slane %v1528_v23, 6  ;;  %v752_v21 = vld [vmem:[%s1953_s3] sm:$0xff]  ;;  %v766_v38 = vld [vmem:[%s1953_s3 + $0x70] sm:$0xff] }
  0x72   : > { %v376_v54 = vrot.slane %v375_v1, 1  ;;  %v383_v61 = vrot.slane %v382_v34, 2  ;;  %v545_v7 = vsel %vm395_vm0, %v544_v49, %v543_v48  ;;  %v553_v45 = vrot.slane %v1532_v25, 5 }
  0x73   : > { %1136 = vmatpush3.bf16.msra.mxu0 %v1135_v17  ;;  %v404_v31 = vsel %vm403_vm4, %v368_v40, %v402_v12  ;;  %v547_v22 = vsel %vm397_vm1, %v546_v2, %v545_v7  ;;  %v555_v17 = vrot.slane %v1536_v27, 4  ;;  %v1144_v50 = vpack.c.bf16 %v753_v62, %v752_v21  ;;  %v767_v40 = vld [vmem:[%s1953_s3 + $0x78] sm:$0xff] }
  0x74   : > { %v377_v53 = vadd.f32 %v376_v54, %v375_v1  ;;  %v384_v14 = vadd.f32 %v383_v61, %v382_v34  ;;  %v548_v63 = vsel %vm399_vm2, %v1520_v16, %v547_v22  ;;  %v755_v16 = vld [vmem:[%s1953_s3 + $0x18] sm:$0xff]  ;;  %v1150_v30 = vpack.c.bf16 %v757_v0, %v756_v57  ;;  %v764_v1 = vld [vmem:[%s1953_s3 + $0x60] sm:$0xff] }
  0x75   : > { %v550_v6 = vsel %vm401_vm3, %v549_v44, %v548_v63  ;;  %v1147_v56 = vpack.c.bf16 %v755_v16, %v754_v24  ;;  %v1153_v4 = vpack.c.bf16 %v759_v58, %v758_v35  ;;  %v1156_v36 = vpack.c.bf16 %v761_v13, %v760_v5 }
  0x76   : > { %v385_v23 = vrot.slane %v384_v14, 1  ;;  %v406_v42 = vsel %vm405_vm5, %v377_v53, %v404_v31  ;;  %v552_v25 = vsel %vm403_vm4, %v551_v9, %v550_v6  ;;  %v1159_v26 = vpack.c.bf16 %v763_v59, %v762_v37 }
  0x77   : > { %v554_v55 = vsel %vm405_vm5, %v553_v45, %v552_v25 }
  0x78   : > { %v386_v8 = vadd.f32 %v385_v23, %v384_v14  ;;  %v556_v27 = vsel %vm407_vm6, %v555_v17, %v554_v55 }
  0x79   : > { %1068 = vmatmul.mubr.msk.f32.vlgmr.msra.gmra.mrb[0].mxu1 %vm313_vm7, %v556_v27 }
  0x7a   : > { %v408_v46 = vsel %vm407_vm6, %v386_v8, %v406_v42  ;;  %1145 = vmatpush3.bf16.msra.mxu1 %v1144_v50  ;;  %1102 = vmatprep.mubr.msk.f32.mxu1 %vm1380_vm9, %v1381_v52  ;;  %v1165_v52 = vpack.c.bf16 %v767_v40, %v766_v38 }
  0x7b   : > { %1146 = vmatprep.subr.bf16.mxu1 %v1378_v3 }
  0x7e   : > { %1148 = vmatpush3.bf16.msra.mxu1 %v1147_v56 }
  0x7f   : > { %1149 = vmatprep.subr.bf16.mxu1 %v1378_v3 }
  0x82   : > { %1151 = vmatpush3.bf16.msra.mxu1 %v1150_v30 }
  0x83   : > { %1152 = vmatprep.subr.bf16.mxu1 %v1378_v3 }
  0x86   : > { %1154 = vmatpush3.bf16.msra.mxu1 %v1153_v4 }
  0x87   : > { %1155 = vmatprep.subr.bf16.mxu1 %v1378_v3 }
  0x8a   : > { %1157 = vmatpush3.bf16.msra.mxu1 %v1156_v36 }
  0x8b   : > { %1158 = vmatprep.subr.bf16.mxu1 %v1378_v3 }
  0x8e   : > { %1160 = vmatpush3.bf16.msra.mxu1 %v1159_v26 }
  0x8f   : > { %1161 = vmatprep.subr.bf16.mxu1 %v1378_v3 }
  0xbf   : > { %v1232_v51 = vpop.permute.xlu0 %1231 }
  0xc0   : > { %v1234_v11 = vunpack.i.h.bf16 %v1232_v51  ;;  %v1233_v18 = vunpack.i.l.bf16 %v1232_v51 }
  0xc2   : > { %v562_v32 = vsel %vm313_vm7, %v1743_v15, %v1233_v18  ;;  %v557_v29 = vsel %vm313_vm7, %v408_v46, %v1234_v11  ;;  %v765_v15 = vld [vmem:[%s1953_s3 + $0x68] sm:$0xff] }
  0xc3   : > { %v1162_v34 = vpack.c.bf16 %v765_v15, %v764_v1 }
  0xc5   : > { %1163 = vmatpush3.bf16.msra.mxu1 %v1162_v34 }
  0xc6   : > { %1164 = vmatprep.subr.bf16.mxu1 %v1378_v3  ;;  %v992_v3 = vld [vmem:[%s1952_s2] ss:$0 sm:$0xff] }
  0xc7   : > { %v1237_v10 = vpop.permute.xlu0 %1236 }
  0xc8   : > { %v1239_v28 = vunpack.i.h.bf16 %v1237_v10  ;;  %v1238_v19 = vunpack.i.l.bf16 %v1237_v10 }
  0xc9   : > { %1166 = vmatpush3.bf16.msra.mxu1 %v1165_v52 }
  0xca   : > { %v563_v41 = vsel %vm558_vm10, %v562_v32, %v1238_v19  ;;  %v559_v43 = vsel %vm558_vm10, %v557_v29, %v1239_v28 }
  0xce   : > { %v1242_v33 = vpop.permute.xlu1 %1241 }
  0xcf   : > { %v1244_v60 = vunpack.i.h.bf16 %v1242_v33  ;;  %v1243_v20 = vunpack.i.l.bf16 %v1242_v33 }
  0xd1   : > { %v564_v39 = vsel %vm560_vm11, %v563_v41, %v1243_v20  ;;  %v561_v47 = vsel %vm560_vm11, %v559_v43, %v1244_v60 }
  0xd2   : > { %674 = vmatprep.mubr.f32.mxu0 %v564_v39 }
  0xd3   : > { %675 = vmatmul.mubr.f32.vlgmr.msra.gmra.mrb[0].mxu0 %v561_v47 }
 0x14c   : > { %v746_v48 = vpop.f32.mrb[0].mxu1 }
 0x14d   : > { %v1069_v49 = vpop.f32.mrb[1].mxu1 }
 0x1a6   : > { %v1034_v2 = vpop.f32.mrb[0].mxu0 }
 0x1a7   : > { %v1035_v54 = vpop.f32.mrb[1].mxu0 }
 0x1a8   : > { %v1036_v61 = vadd.f32 %v1035_v54, %v1034_v2 }
 0x1aa   : > { %v677_v12 = vadd.f32 %v1036_v61, %v992_v3 }
 0x1ac   : > { %v747_v44 = vadd.f32 %v746_v48, %v677_v12 }
 0x1ae   : > { %v750_v31 = vmax.f32 %v747_v44, 0.0 }
 0x1b0   : > { %751 = vst [vmem:[%s273_s10] sm:$0xff] %v750_v31  ;;  %1103 = vmatmul.mubr.f32.vlgmr.msra.gmra.mrb[2].mxu1 %v750_v31 }
 0x1b1   : > { %1286 = shalt.err (!%p1283_p7)
}
 0x1b2   : > { %s1287_s26 = scalar_lea.hbm %s1877_s12, 128  ;;  %s1291_s14 = scalar_lea.hbm %s1956_s6, 256 }
 0x1b3   : > { %p1288_p8 = scmp.ne.s32.totalorder %s1877_s12, %s1287_s26  ;;  %p1292_p1 = scmp.lt.u32.totalorder %s1877_s12, %s1956_s6 }
 0x1b4   : > { %p1293_p0 = scmp.lt.u32.totalorder %s1291_s14, %s1287_s26  ;;  %p1295_p6 = scmp.lt.u32.totalorder %s1287_s26, %s1877_s12 }
 0x1b5   : > { %p1289_p11 = pnand %p1288_p8, %p1967_p9 }
 0x1b6   : > { %p1294_p5 = por %p1293_p0, %p1292_p1 }
 0x1b7   : > { %p1290_p13 = pneg %p1289_p11 }
 0x1b8   : > { %p1296_p10 = por %p1295_p6, %p1294_p5 }
 0x1ba   : > { %p1297_p12 = pnand %p1296_p10, %p1290_p13 }
 0x1bc   : > { %1300 = shalt.err (!%p1297_p12)
}
 0x1bd   : > { %1172 = dma.vmem_to_hbm [thread:$0]  (%p1967_p9), %s879_s16, 128, %s1877_s12, %s852_s9   ;;  %v994_v7 = vld [vmem:[%s1954_s4] ss:$0 sm:$0xff] }
 0x1be   : > { %s266_s19 = scalar_lea.vmem [#allocation5], %s987_s29  ;;  %s1907_s14 = scalar_lea.hbm %s1955_s5, %s997_s13 }
 0x1bf   : > { %s865_s28 = sshll.u32 %s266_s19, 4  ;;  %s847_s12 = scalar_lea.sflag [#allocation4], %s1863_s20  ;;  %s1909_s28 = int_to_ptr.vmem [resolvable:$true] %s865_s28 }
 0x1c0   : > { %s1301_s16 = scalar_lea.vmem %s1909_s28, 128  ;;  %s1383_s29 = smov [#allocation5]  }
 0x1c1   : > { %p1302_p2 = scmp.ne.s32.totalorder %s1909_s28, %s1301_s16  ;;  %s1305_s9 = sshll.u32 %s1383_s29, 4  ;;  %s1306_s9 = int_to_ptr.vmem [resolvable:$false] %s1305_s9 }
 0x1c2   : > { %s1307_s25 = scalar_lea.vmem %s1306_s9, 256  ;;  %p1308_p7 = scmp.lt.s32.totalorder %s1909_s28, %s1306_s9 }
 0x1c3   : > { %p1303_p3 = pnand %p1302_p2, %p1967_p9  ;;  %p1309_p8 = scmp.lt.s32.totalorder %s1307_s25, %s1301_s16 }
 0x1c5   : > { %p1304_p4 = pneg %p1303_p3  ;;  %p1310_p11 = por %p1309_p8, %p1308_p7 }
 0x1c7   : > { %p1311_p13 = pnand %p1310_p11, %p1304_p4 }
 0x283   : > { %v841_v9 = vpop.f32.mrb[2].mxu1 }
 0x284   : > { %v842_v53 = vadd.f32 %v994_v7, %v841_v9  ;;  %v1104_v14 = vpop.f32.mrb[3].mxu1 }
 0x286   : > { %845 = vst [vmem:[%s266_s19] sm:$0xff] %v842_v53 }
 0x287   : > { %1314 = shalt.err (!%p1311_p13)
}
 0x288   : > { %s1315_s20 = scalar_lea.hbm %s1907_s14, 128  ;;  %s1319_s17 = scalar_lea.hbm %s1955_s5, 256 }
 0x289   : > { %p1316_p1 = scmp.ne.s32.totalorder %s1907_s14, %s1315_s20  ;;  %p1320_p6 = scmp.lt.u32.totalorder %s1907_s14, %s1955_s5 }
 0x28a   : > { %p1321_p10 = scmp.lt.u32.totalorder %s1319_s17, %s1315_s20  ;;  %p1323_p2 = scmp.lt.u32.totalorder %s1315_s20, %s1907_s14 }
 0x28b   : > { %p1317_p0 = pnand %p1316_p1, %p1967_p9 }
 0x28c   : > { %p1322_p12 = por %p1321_p10, %p1320_p6 }
 0x28d   : > { %p1318_p5 = pneg %p1317_p0 }
 0x28e   : > { %p1324_p3 = por %p1323_p2, %p1322_p12 }
 0x290   : > { %p1325_p4 = pnand %p1324_p3, %p1318_p5 }
 0x292   : > { %1328 = shalt.err (!%p1325_p4)
}
 0x293   : > { %1171 = dma.vmem_to_hbm [thread:$0]  (%p1967_p9), %s1909_s28, 128, %s1907_s14, %s847_s12  }
 0x294 PF: > { %p1188_p7 = scmp.ge.s32.totalorder %s1371_s24, 2  ;;  %s890_s19 = sand.u32 1, %s1359_s21  }
 0x295   : > { %p1968_p8 = scmp.ne.s32.totalorder %s1961_s8, 0  ;;  %s891_s26 = scalar_lea.sflag [#allocation4], %s890_s19 }
 0x297   : > { %p1180_p11 = pnand %p1188_p7, %p1968_p8 }
 0x299   : > { %1350 = dma.done.wait (!%p1180_p11), %s891_s26, 128  }
 0x29a   : > { %1352 = vsyncadd (!%p1180_p11), %s891_s26, 4294967168  ;;  %s900_s10 = scalar_lea.sflag [#allocation7], %s890_s19 }
 0x29b   : > { %1354 = dma.done.wait (!%p1180_p11), %s900_s10, 128  }
 0x29c   : > { %1356 = vsyncadd (!%p1180_p11), %s900_s10, 4294967168  ;;  %p21_p9 = scmp.ge.s32.totalorder %s1444_s27, 4   ;;  %s1969_s21 = smov %s1363_s22 }
 0x29d   : > { %s1970_s22 = smov %s1367_s23  ;;  %s1971_s23 = smov %s1455_s30 }
 0x29e   : > { %s1972_s24 = smov %s1444_s27  ;;  %23 = sbr.rel (!%p21_p9) target bundleno = 6 (0x6), region = 97 }
 0x2a5   :  { %905 = vsyncpa [#allocation3], 1 }
 0x2a6   :  { %907 = vsyncpa [#allocation3 + $0x1], 1 }
 0x2a7   :  { %908 = vsyncpa [#allocation4], 1 }
 0x2a8   :  { %910 = vsyncpa [#allocation4 + $0x1], 1 }
 0x2a9   :  { %911 = vsyncpa [#allocation7], 1 }
 0x2aa   :  { %913 = vsyncpa [#allocation7 + $0x1], 1 }

</bundles_post_ra>
